<compile_context>
chip_gen: v7x
topology: tpu7x:2x2x1
jax: 0.10.0
libtpu: 0.0.40
codegen_flags: <defaults>
</compile_context>

<pallas_src>
import functools

import jax
import jax.numpy as jnp
from jax.experimental import pallas as pl
from jax.experimental.pallas import tpu as pltpu


def _mha_kernel(q_ref, k_ref, wq_ref, wk_ref, wv_ref, o_ref, *,
                num_heads: int, key_dim: int, mxu_dtype):
    # q_ref : [B, T_q, Dq]   k_ref : [B, T_k, Dk]
    # wq_ref: [Dq, U]        wk_ref/wv_ref: [Dk, U]
    # o_ref : [B, T_q, U]
    B, T_q, Dq = q_ref.shape
    _, T_k, Dk = k_ref.shape
    U = wq_ref.shape[1]
    H = num_heads
    d = U // H
    # NOTE: the PyTorch module scales scores by key_dim ** 0.5 (the key *feature* dim,
    # not the per-head dim) -- kept as-is to match the reference semantics.
    scale = 1.0 / (float(key_dim) ** 0.5)

    cast = (lambda x: x.astype(mxu_dtype)) if mxu_dtype is not None else (lambda x: x)

    # ---- Fused projections: batch folded into the matmul M dimension ----------------
    q2 = q_ref[...].reshape(B * T_q, Dq)          # T_q is sublane-aligned (wrapper guard)
    k2 = k_ref[...].reshape(B * T_k, Dk)

    qs = jnp.dot(cast(q2), cast(wq_ref[...]),
                 preferred_element_type=jnp.float32) * scale        # [B*T_q, U]
    ks = jnp.dot(cast(k2), cast(wk_ref[...]),
                 preferred_element_type=jnp.float32)                # [B*T_k, U]
    vs = jnp.dot(cast(k2), cast(wv_ref[...]),
                 preferred_element_type=jnp.float32)                # [B*T_k, U]

    # ---- Head-major views with a single leading batch axis G = B*H ------------------
    def to_heads(x, T):
        return jnp.stack(
            [x[b * T:(b + 1) * T, h * d:(h + 1) * d]
             for b in range(B) for h in range(H)],
            axis=0)                                                  # [G, T, d]

    qh = to_heads(qs, T_q)
    kh = to_heads(ks, T_k)
    vh = to_heads(vs, T_k)

    # ---- Scores for every (batch, head) in one batched contraction (no explicit .T) -
    s = jnp.einsum('gqd,gkd->gqk', cast(qh), cast(kh),
                   preferred_element_type=jnp.float32)               # [G, T_q, T_k]

    # ---- Single numerically-stable softmax over the whole slab ----------------------
    s = s - jnp.max(s, axis=-1, keepdims=True)
    p = jnp.exp(s)
    p = p * pl.reciprocal(jnp.sum(p, axis=-1, keepdims=True), approx=True)

    # ---- PV matmul for every (batch, head) in one batched contraction ---------------
    o = jnp.einsum('gqk,gkd->gqd', cast(p), cast(vh),
                   preferred_element_type=jnp.float32)               # [G, T_q, d]

    # ---- Re-assemble one lane-dense [B, T_q, U] slab and store it once --------------
    rows = [jnp.concatenate([o[b * H + h] for h in range(H)], axis=-1)   # [T_q, U]
            for b in range(B)]
    o_ref[...] = jnp.stack(rows, axis=0).astype(o_ref.dtype)


def multi_head_attention(query, key, w_query, w_key, w_value, *,
                         num_heads: int, key_dim: int,
                         batch_block=None, mxu_dtype=None):
    """query: [N, T_q, Dq], key: [N, T_k, Dk], weights: [D_in, num_units]."""
    N, T_q, Dq = query.shape
    Nk, T_k, Dk = key.shape
    assert N == Nk
    U = w_query.shape[1]
    assert U % num_heads == 0

    if batch_block is None:
        # Fuse the whole (small) batch into a single grid step when the time axes are
        # sublane-aligned (so the [B, T, D] -> [B*T, D] collapse is layout-free);
        # otherwise fall back to one batch element per step.
        batch_block = N if (T_q % 8 == 0 and T_k % 8 == 0) else 1
    batch_block = max(1, min(int(batch_block), N))
    while N % batch_block:          # pick the largest divisor of N not exceeding it
        batch_block -= 1

    kernel = functools.partial(_mha_kernel, num_heads=num_heads, key_dim=key_dim,
                               mxu_dtype=mxu_dtype)

    return pl.pallas_call(
        kernel,
        out_shape=jax.ShapeDtypeStruct((N, T_q, U), query.dtype),
        grid_spec=pltpu.PrefetchScalarGridSpec(
            num_scalar_prefetch=0,
            grid=(N // batch_block,),
            in_specs=[
                pl.BlockSpec((batch_block, T_q, Dq), lambda n: (n, 0, 0)),  # query block
                pl.BlockSpec((batch_block, T_k, Dk), lambda n: (n, 0, 0)),  # key block
                pl.BlockSpec((Dq, U), lambda n: (0, 0)),                    # W_query
                pl.BlockSpec((Dk, U), lambda n: (0, 0)),                    # W_key
                pl.BlockSpec((Dk, U), lambda n: (0, 0)),                    # W_value
            ],
            out_specs=pl.BlockSpec((batch_block, T_q, U), lambda n: (n, 0, 0)),
        ),
        compiler_params=pltpu.CompilerParams(
            dimension_semantics=("parallel",)),
    )(query, key, w_query, w_key, w_value)


def _reference(query, key, w_query, w_key, w_value, *, num_heads, key_dim):
    """Pure-JAX reference mirroring the PyTorch forward."""
    qs = query @ w_query            # [N, T_q, U]
    ks = key @ w_key                # [N, T_k, U]
    vs = key @ w_value              # [N, T_k, U]
    qh = jnp.stack(jnp.split(qs, num_heads, axis=2), axis=0)   # [h, N, T_q, d]
    kh = jnp.stack(jnp.split(ks, num_heads, axis=2), axis=0)
    vh = jnp.stack(jnp.split(vs, num_heads, axis=2), axis=0)
    scores = jnp.einsum('hnqd,hnkd->hnqk', qh, kh) / (key_dim ** 0.5)
    scores = jax.nn.softmax(scores, axis=3)
    out = jnp.einsum('hnqk,hnkd->hnqd', scores, vh)            # [h, N, T_q, d]
    out = jnp.concatenate(jnp.split(out, num_heads, axis=0), axis=3)[0]
    return out


if __name__ == "__main__":
    # Small shapes consistent with the module's forward.
    N, T_q, T_k = 2, 8, 8
    query_dim, key_dim_feat = 16, 16
    num_units, num_heads = 32, 4

    key0 = jax.random.PRNGKey(0)
    k1, k2, k3, k4, k5 = jax.random.split(key0, 5)

    query = jax.random.normal(k1, (N, T_q, query_dim), dtype=jnp.float32)
    key_in = jax.random.normal(k2, (N, T_k, key_dim_feat), dtype=jnp.float32)

    # Deterministic synthetic weights, stored as [in_features, out_features]
    # (equivalent to nn.Linear's weight.T).
    scale_q = 1.0 / (query_dim ** 0.5)
    scale_k = 1.0 / (key_dim_feat ** 0.5)
    w_query = scale_q * jax.random.normal(k3, (query_dim, num_units), dtype=jnp.float32)
    w_key = scale_k * jax.random.normal(k4, (key_dim_feat, num_units), dtype=jnp.float32)
    w_value = scale_k * jax.random.normal(k5, (key_dim_feat, num_units), dtype=jnp.float32)

    # Default: f32 MXU operands (bit-compatible with the PyTorch module). For v6e/v7x
    # throughput, pass mxu_dtype=jnp.bfloat16 (f32 accumulation is kept either way).
    out = multi_head_attention(query, key_in, w_query, w_key, w_value,
                               num_heads=num_heads, key_dim=key_dim_feat)
    out = jax.block_until_ready(out)

    ref = _reference(query, key_in, w_query, w_key, w_value,
                     num_heads=num_heads, key_dim=key_dim_feat)
    assert out.shape == (N, T_q, num_units)
    # Tolerance allows for the approximate (EUP) reciprocal in the softmax denominator.
    assert jnp.allclose(out, ref, atol=1e-2, rtol=1e-2), "Pallas kernel mismatch vs reference"

    print("KERNEL_OK")
</pallas_src>

<mosaic_0001>
module attributes {stable_mosaic.version = 11 : i64} {
  func.func @_mha_kernel(%arg0: i32, %arg1: memref<2x8x16xf32, #tpu.memory_space<vmem>>, %arg2: memref<2x8x16xf32, #tpu.memory_space<vmem>>, %arg3: memref<16x32xf32, #tpu.memory_space<vmem>>, %arg4: memref<16x32xf32, #tpu.memory_space<vmem>>, %arg5: memref<16x32xf32, #tpu.memory_space<vmem>>, %arg6: memref<2x8x32xf32, #tpu.memory_space<vmem>>) attributes {dimension_semantics = [#tpu.dimension_semantics<parallel>], iteration_bounds = array<i64: 1>, scalar_prefetch = 0 : i64, scratch_operands = 0 : i64, tpu.core_type = #tpu.core_type<tc>, window_params = [{transform_indices = @transform_0, window_bounds = array<i64: 2, 8, 16>}, {transform_indices = @transform_1, window_bounds = array<i64: 2, 8, 16>}, {pipeline_mode = #tpu.pipeline_mode<synchronous>, transform_indices = @transform_2, window_bounds = array<i64: 16, 32>}, {pipeline_mode = #tpu.pipeline_mode<synchronous>, transform_indices = @transform_3, window_bounds = array<i64: 16, 32>}, {pipeline_mode = #tpu.pipeline_mode<synchronous>, transform_indices = @transform_4, window_bounds = array<i64: 16, 32>}, {transform_indices = @transform_5, window_bounds = array<i64: 2, 8, 32>}]} {
    %c0 = arith.constant 0 : index
    %c0_0 = arith.constant 0 : index
    %c0_1 = arith.constant 0 : index
    %0 = vector.load %arg1[%c0, %c0_0, %c0_1] : memref<2x8x16xf32, #tpu.memory_space<vmem>>, vector<2x8x16xf32>
    %1 = vector.shape_cast %0 : vector<2x8x16xf32> to vector<16x16xf32>
    %c0_2 = arith.constant 0 : index
    %c0_3 = arith.constant 0 : index
    %c0_4 = arith.constant 0 : index
    %2 = vector.load %arg2[%c0_2, %c0_3, %c0_4] : memref<2x8x16xf32, #tpu.memory_space<vmem>>, vector<2x8x16xf32>
    %3 = vector.shape_cast %2 : vector<2x8x16xf32> to vector<16x16xf32>
    %c0_5 = arith.constant 0 : index
    %c0_6 = arith.constant 0 : index
    %4 = vector.load %arg3[%c0_5, %c0_6] : memref<16x32xf32, #tpu.memory_space<vmem>>, vector<16x32xf32>
    %cst = arith.constant dense<0.000000e+00> : vector<16x32xf32>
    %5 = tpu.matmul %1, %4, %cst {dimension_numbers = #tpu.dot_dimension_numbers<[1], [0], [0], [1], [0, 0, 1, 1], [], []>} : vector<16x16xf32>, vector<16x32xf32>, vector<16x32xf32> -> vector<16x32xf32>
    %cst_7 = arith.constant 2.500000e-01 : f32
    %6 = vector.broadcast %cst_7 : f32 to vector<16x32xf32>
    %7 = arith.mulf %5, %6 : vector<16x32xf32>
    %c0_8 = arith.constant 0 : index
    %c0_9 = arith.constant 0 : index
    %8 = vector.load %arg4[%c0_8, %c0_9] : memref<16x32xf32, #tpu.memory_space<vmem>>, vector<16x32xf32>
    %cst_10 = arith.constant dense<0.000000e+00> : vector<16x32xf32>
    %9 = tpu.matmul %3, %8, %cst_10 {dimension_numbers = #tpu.dot_dimension_numbers<[1], [0], [0], [1], [0, 0, 1, 1], [], []>} : vector<16x16xf32>, vector<16x32xf32>, vector<16x32xf32> -> vector<16x32xf32>
    %c0_11 = arith.constant 0 : index
    %c0_12 = arith.constant 0 : index
    %10 = vector.load %arg5[%c0_11, %c0_12] : memref<16x32xf32, #tpu.memory_space<vmem>>, vector<16x32xf32>
    %cst_13 = arith.constant dense<0.000000e+00> : vector<16x32xf32>
    %11 = tpu.matmul %3, %10, %cst_13 {dimension_numbers = #tpu.dot_dimension_numbers<[1], [0], [0], [1], [0, 0, 1, 1], [], []>} : vector<16x16xf32>, vector<16x32xf32>, vector<16x32xf32> -> vector<16x32xf32>
    %12 = vector.extract_strided_slice %7 {offsets = [0, 0], sizes = [8, 8], strides = [1, 1]} : vector<16x32xf32> to vector<8x8xf32>
    %13 = vector.extract_strided_slice %7 {offsets = [0, 8], sizes = [8, 8], strides = [1, 1]} : vector<16x32xf32> to vector<8x8xf32>
    %14 = vector.extract_strided_slice %7 {offsets = [0, 16], sizes = [8, 8], strides = [1, 1]} : vector<16x32xf32> to vector<8x8xf32>
    %15 = vector.extract_strided_slice %7 {offsets = [0, 24], sizes = [8, 8], strides = [1, 1]} : vector<16x32xf32> to vector<8x8xf32>
    %16 = vector.extract_strided_slice %7 {offsets = [8, 0], sizes = [8, 8], strides = [1, 1]} : vector<16x32xf32> to vector<8x8xf32>
    %17 = vector.extract_strided_slice %7 {offsets = [8, 8], sizes = [8, 8], strides = [1, 1]} : vector<16x32xf32> to vector<8x8xf32>
    %18 = vector.extract_strided_slice %7 {offsets = [8, 16], sizes = [8, 8], strides = [1, 1]} : vector<16x32xf32> to vector<8x8xf32>
    %19 = vector.extract_strided_slice %7 {offsets = [8, 24], sizes = [8, 8], strides = [1, 1]} : vector<16x32xf32> to vector<8x8xf32>
    %20 = vector.shape_cast %12 : vector<8x8xf32> to vector<1x8x8xf32>
    %21 = vector.shape_cast %13 : vector<8x8xf32> to vector<1x8x8xf32>
    %22 = vector.shape_cast %14 : vector<8x8xf32> to vector<1x8x8xf32>
    %23 = vector.shape_cast %15 : vector<8x8xf32> to vector<1x8x8xf32>
    %24 = vector.shape_cast %16 : vector<8x8xf32> to vector<1x8x8xf32>
    %25 = vector.shape_cast %17 : vector<8x8xf32> to vector<1x8x8xf32>
    %26 = vector.shape_cast %18 : vector<8x8xf32> to vector<1x8x8xf32>
    %27 = vector.shape_cast %19 : vector<8x8xf32> to vector<1x8x8xf32>
    %28 = tpu.concatenate %20, %21, %22, %23, %24, %25, %26, %27 in 0 : vector<1x8x8xf32>, vector<1x8x8xf32>, vector<1x8x8xf32>, vector<1x8x8xf32>, vector<1x8x8xf32>, vector<1x8x8xf32>, vector<1x8x8xf32>, vector<1x8x8xf32> -> vector<8x8x8xf32>
    %29 = vector.extract_strided_slice %9 {offsets = [0, 0], sizes = [8, 8], strides = [1, 1]} : vector<16x32xf32> to vector<8x8xf32>
    %30 = vector.extract_strided_slice %9 {offsets = [0, 8], sizes = [8, 8], strides = [1, 1]} : vector<16x32xf32> to vector<8x8xf32>
    %31 = vector.extract_strided_slice %9 {offsets = [0, 16], sizes = [8, 8], strides = [1, 1]} : vector<16x32xf32> to vector<8x8xf32>
    %32 = vector.extract_strided_slice %9 {offsets = [0, 24], sizes = [8, 8], strides = [1, 1]} : vector<16x32xf32> to vector<8x8xf32>
    %33 = vector.extract_strided_slice %9 {offsets = [8, 0], sizes = [8, 8], strides = [1, 1]} : vector<16x32xf32> to vector<8x8xf32>
    %34 = vector.extract_strided_slice %9 {offsets = [8, 8], sizes = [8, 8], strides = [1, 1]} : vector<16x32xf32> to vector<8x8xf32>
    %35 = vector.extract_strided_slice %9 {offsets = [8, 16], sizes = [8, 8], strides = [1, 1]} : vector<16x32xf32> to vector<8x8xf32>
    %36 = vector.extract_strided_slice %9 {offsets = [8, 24], sizes = [8, 8], strides = [1, 1]} : vector<16x32xf32> to vector<8x8xf32>
    %37 = vector.shape_cast %29 : vector<8x8xf32> to vector<1x8x8xf32>
    %38 = vector.shape_cast %30 : vector<8x8xf32> to vector<1x8x8xf32>
    %39 = vector.shape_cast %31 : vector<8x8xf32> to vector<1x8x8xf32>
    %40 = vector.shape_cast %32 : vector<8x8xf32> to vector<1x8x8xf32>
    %41 = vector.shape_cast %33 : vector<8x8xf32> to vector<1x8x8xf32>
    %42 = vector.shape_cast %34 : vector<8x8xf32> to vector<1x8x8xf32>
    %43 = vector.shape_cast %35 : vector<8x8xf32> to vector<1x8x8xf32>
    %44 = vector.shape_cast %36 : vector<8x8xf32> to vector<1x8x8xf32>
    %45 = tpu.concatenate %37, %38, %39, %40, %41, %42, %43, %44 in 0 : vector<1x8x8xf32>, vector<1x8x8xf32>, vector<1x8x8xf32>, vector<1x8x8xf32>, vector<1x8x8xf32>, vector<1x8x8xf32>, vector<1x8x8xf32>, vector<1x8x8xf32> -> vector<8x8x8xf32>
    %46 = vector.extract_strided_slice %11 {offsets = [0, 0], sizes = [8, 8], strides = [1, 1]} : vector<16x32xf32> to vector<8x8xf32>
    %47 = vector.extract_strided_slice %11 {offsets = [0, 8], sizes = [8, 8], strides = [1, 1]} : vector<16x32xf32> to vector<8x8xf32>
    %48 = vector.extract_strided_slice %11 {offsets = [0, 16], sizes = [8, 8], strides = [1, 1]} : vector<16x32xf32> to vector<8x8xf32>
    %49 = vector.extract_strided_slice %11 {offsets = [0, 24], sizes = [8, 8], strides = [1, 1]} : vector<16x32xf32> to vector<8x8xf32>
    %50 = vector.extract_strided_slice %11 {offsets = [8, 0], sizes = [8, 8], strides = [1, 1]} : vector<16x32xf32> to vector<8x8xf32>
    %51 = vector.extract_strided_slice %11 {offsets = [8, 8], sizes = [8, 8], strides = [1, 1]} : vector<16x32xf32> to vector<8x8xf32>
    %52 = vector.extract_strided_slice %11 {offsets = [8, 16], sizes = [8, 8], strides = [1, 1]} : vector<16x32xf32> to vector<8x8xf32>
    %53 = vector.extract_strided_slice %11 {offsets = [8, 24], sizes = [8, 8], strides = [1, 1]} : vector<16x32xf32> to vector<8x8xf32>
    %54 = vector.shape_cast %46 : vector<8x8xf32> to vector<1x8x8xf32>
    %55 = vector.shape_cast %47 : vector<8x8xf32> to vector<1x8x8xf32>
    %56 = vector.shape_cast %48 : vector<8x8xf32> to vector<1x8x8xf32>
    %57 = vector.shape_cast %49 : vector<8x8xf32> to vector<1x8x8xf32>
    %58 = vector.shape_cast %50 : vector<8x8xf32> to vector<1x8x8xf32>
    %59 = vector.shape_cast %51 : vector<8x8xf32> to vector<1x8x8xf32>
    %60 = vector.shape_cast %52 : vector<8x8xf32> to vector<1x8x8xf32>
    %61 = vector.shape_cast %53 : vector<8x8xf32> to vector<1x8x8xf32>
    %62 = tpu.concatenate %54, %55, %56, %57, %58, %59, %60, %61 in 0 : vector<1x8x8xf32>, vector<1x8x8xf32>, vector<1x8x8xf32>, vector<1x8x8xf32>, vector<1x8x8xf32>, vector<1x8x8xf32>, vector<1x8x8xf32>, vector<1x8x8xf32> -> vector<8x8x8xf32>
    "tpu.trace_start"() <{level = 10 : i32, message = "gqd,gkd->gqk"}> : () -> ()
    %cst_14 = arith.constant dense<0.000000e+00> : vector<8x8x8xf32>
    %63 = tpu.matmul %28, %45, %cst_14 {dimension_numbers = #tpu.dot_dimension_numbers<[2], [2], [1], [1], [0, 0, 0, 1, 1, 1], [0], [0]>} : vector<8x8x8xf32>, vector<8x8x8xf32>, vector<8x8x8xf32> -> vector<8x8x8xf32>
    "tpu.trace_stop"() : () -> ()
    %cst_15 = arith.constant dense<0xFF800000> : vector<8x8xf32>
    %64 = vector.multi_reduction <maximumf>, %63, %cst_15 [2] : vector<8x8x8xf32> to vector<8x8xf32>
    %65 = vector.shape_cast %64 : vector<8x8xf32> to vector<8x8x1xf32>
    %66 = vector.broadcast %65 : vector<8x8x1xf32> to vector<8x8x8xf32>
    %67 = arith.subf %63, %66 : vector<8x8x8xf32>
    %68 = math.exp %67 : vector<8x8x8xf32>
    %cst_16 = arith.constant dense<0.000000e+00> : vector<8x8xf32>
    %69 = vector.multi_reduction <add>, %68, %cst_16 [2] : vector<8x8x8xf32> to vector<8x8xf32>
    %70 = vector.shape_cast %69 : vector<8x8xf32> to vector<8x8x1xf32>
    %71 = tpu.reciprocal %70 {approx = true} : vector<8x8x1xf32> -> vector<8x8x1xf32>
    %72 = vector.broadcast %71 : vector<8x8x1xf32> to vector<8x8x8xf32>
    %73 = arith.mulf %68, %72 : vector<8x8x8xf32>
    "tpu.trace_start"() <{level = 10 : i32, message = "gqk,gkd->gqd"}> : () -> ()
    %cst_17 = arith.constant dense<0.000000e+00> : vector<8x8x8xf32>
    %74 = tpu.matmul %73, %62, %cst_17 {dimension_numbers = #tpu.dot_dimension_numbers<[2], [1], [1], [2], [0, 0, 0, 1, 1, 2], [0], [0]>} : vector<8x8x8xf32>, vector<8x8x8xf32>, vector<8x8x8xf32> -> vector<8x8x8xf32>
    "tpu.trace_stop"() : () -> ()
    %75 = vector.extract_strided_slice %74 {offsets = [0, 0, 0], sizes = [1, 8, 8], strides = [1, 1, 1]} : vector<8x8x8xf32> to vector<1x8x8xf32>
    %76 = vector.shape_cast %75 : vector<1x8x8xf32> to vector<8x8xf32>
    %77 = vector.extract_strided_slice %74 {offsets = [1, 0, 0], sizes = [1, 8, 8], strides = [1, 1, 1]} : vector<8x8x8xf32> to vector<1x8x8xf32>
    %78 = vector.shape_cast %77 : vector<1x8x8xf32> to vector<8x8xf32>
    %79 = vector.extract_strided_slice %74 {offsets = [2, 0, 0], sizes = [1, 8, 8], strides = [1, 1, 1]} : vector<8x8x8xf32> to vector<1x8x8xf32>
    %80 = vector.shape_cast %79 : vector<1x8x8xf32> to vector<8x8xf32>
    %81 = vector.extract_strided_slice %74 {offsets = [3, 0, 0], sizes = [1, 8, 8], strides = [1, 1, 1]} : vector<8x8x8xf32> to vector<1x8x8xf32>
    %82 = vector.shape_cast %81 : vector<1x8x8xf32> to vector<8x8xf32>
    %83 = tpu.concatenate %76, %78, %80, %82 in 1 : vector<8x8xf32>, vector<8x8xf32>, vector<8x8xf32>, vector<8x8xf32> -> vector<8x32xf32>
    %84 = vector.extract_strided_slice %74 {offsets = [4, 0, 0], sizes = [1, 8, 8], strides = [1, 1, 1]} : vector<8x8x8xf32> to vector<1x8x8xf32>
    %85 = vector.shape_cast %84 : vector<1x8x8xf32> to vector<8x8xf32>
    %86 = vector.extract_strided_slice %74 {offsets = [5, 0, 0], sizes = [1, 8, 8], strides = [1, 1, 1]} : vector<8x8x8xf32> to vector<1x8x8xf32>
    %87 = vector.shape_cast %86 : vector<1x8x8xf32> to vector<8x8xf32>
    %88 = vector.extract_strided_slice %74 {offsets = [6, 0, 0], sizes = [1, 8, 8], strides = [1, 1, 1]} : vector<8x8x8xf32> to vector<1x8x8xf32>
    %89 = vector.shape_cast %88 : vector<1x8x8xf32> to vector<8x8xf32>
    %90 = vector.extract_strided_slice %74 {offsets = [7, 0, 0], sizes = [1, 8, 8], strides = [1, 1, 1]} : vector<8x8x8xf32> to vector<1x8x8xf32>
    %91 = vector.shape_cast %90 : vector<1x8x8xf32> to vector<8x8xf32>
    %92 = tpu.concatenate %85, %87, %89, %91 in 1 : vector<8x8xf32>, vector<8x8xf32>, vector<8x8xf32>, vector<8x8xf32> -> vector<8x32xf32>
    %93 = vector.shape_cast %83 : vector<8x32xf32> to vector<1x8x32xf32>
    %94 = vector.shape_cast %92 : vector<8x32xf32> to vector<1x8x32xf32>
    %95 = tpu.concatenate %93, %94 in 0 : vector<1x8x32xf32>, vector<1x8x32xf32> -> vector<2x8x32xf32>
    %c0_18 = arith.constant 0 : index
    %c0_19 = arith.constant 0 : index
    %c0_20 = arith.constant 0 : index
    %96 = vector.load %arg6[%c0_18, %c0_19, %c0_20] : memref<2x8x32xf32, #tpu.memory_space<vmem>>, vector<2x8x32xf32>
    tpu.vector_store %arg6[%c0_18, %c0_19, %c0_20], %95 {strides = array<i32>} : memref<2x8x32xf32, #tpu.memory_space<vmem>>, vector<2x8x32xf32>,
    return
  }
  func.func @transform_0(%arg0: i32) -> (i32, i32, i32) {
    %c0_i32 = arith.constant 0 : i32
    %c0_i32_0 = arith.constant 0 : i32
    %c0_i32_1 = arith.constant 0 : i32
    return %arg0, %c0_i32, %c0_i32_0 : i32, i32, i32
  }
  func.func @transform_1(%arg0: i32) -> (i32, i32, i32) {
    %c0_i32 = arith.constant 0 : i32
    %c0_i32_0 = arith.constant 0 : i32
    %c0_i32_1 = arith.constant 0 : i32
    return %arg0, %c0_i32, %c0_i32_0 : i32, i32, i32
  }
  func.func @transform_2(%arg0: i32) -> (i32, i32) {
    %c0_i32 = arith.constant 0 : i32
    %c0_i32_0 = arith.constant 0 : i32
    %c0_i32_1 = arith.constant 0 : i32
    return %c0_i32, %c0_i32_0 : i32, i32
  }
  func.func @transform_3(%arg0: i32) -> (i32, i32) {
    %c0_i32 = arith.constant 0 : i32
    %c0_i32_0 = arith.constant 0 : i32
    %c0_i32_1 = arith.constant 0 : i32
    return %c0_i32, %c0_i32_0 : i32, i32
  }
  func.func @transform_4(%arg0: i32) -> (i32, i32) {
    %c0_i32 = arith.constant 0 : i32
    %c0_i32_0 = arith.constant 0 : i32
    %c0_i32_1 = arith.constant 0 : i32
    return %c0_i32, %c0_i32_0 : i32, i32
  }
  func.func @transform_5(%arg0: i32) -> (i32, i32, i32) {
    %c0_i32 = arith.constant 0 : i32
    %c0_i32_0 = arith.constant 0 : i32
    %c0_i32_1 = arith.constant 0 : i32
    return %arg0, %c0_i32, %c0_i32_0 : i32, i32, i32
  }
}

</mosaic_0001>

<bundles_post_ra>
// kernel: tpu_custom_call.1
= control target key start
LH: loop header
LB: loop body
LE: loop exit
PB: predicated region body
PF: predicated region fallthrough
CT: control target
= control target key end

     0   :  { %10 = vsyncpa [#allocation3], 0  ;;  %s2362_s0 = inlined_call_operand.hbm [shape: f32[2,8,16], index: 0, kind: input, shape index: {}]   ;;  %s2363_s1 = inlined_call_operand.hbm [shape: f32[2,8,16], index: 1, kind: input, shape index: {}]   ;;  %s2364_s2 = inlined_call_operand.hbm [shape: f32[16,32], index: 2, kind: input, shape index: {}]   ;;  %s2365_s3 = inlined_call_operand.hbm [shape: f32[16,32], index: 3, kind: input, shape index: {}]   ;;  %s2366_s4 = inlined_call_operand.hbm [shape: f32[16,32], index: 4, kind: input, shape index: {}]   ;;  %s2367_s5 = inlined_call_operand.hbm [shape: f32[2,8,32], index: 5, kind: output, shape index: {}]  }
   0x1   :  { %11 = vsyncpa [#allocation6], 0 }
   0x2   :  { %12 = vsyncpa [#allocation9], 0 }
   0x3   :  { %13 = vsyncpa [#allocation4], 0  ;;  %s2079_s18 = smov [#allocation5]   ;;  %s2080_s20 = smov [#allocation8]  }
   0x4   :  { %s31_s19 = sshll.u32 %s2079_s18, 4  ;;  %s55_s21 = sshll.u32 %s2080_s20, 4  ;;  %s32_s19 = int_to_ptr.vmem [resolvable:$true] %s31_s19  ;;  %s2124_s21 = int_to_ptr.vmem [resolvable:$true] %s55_s21 }
   0x5   :  { %s1939_s24 = scalar_lea.hbm %s2363_s1, 256 }
   0x6   :  { %p1940_p0 = scmp.ne.s32.totalorder %s2363_s1, %s1939_s24  ;;  %p1943_p1 = scmp.lt.u32.totalorder %s1939_s24, %s2363_s1 }
   0x8   :  { %p1945_p2 = pnand %p1943_p1, %p1940_p0 }
   0xa   :  { %1948 = shalt.err (!%p1945_p2)
}
   0xb   :  { %s1949_s29 = scalar_lea.vmem %s32_s19, 256  ;;  %p1954_p4 = scmp.lt.s32.totalorder %s32_s19, %s32_s19 }
   0xc   :  { %p1950_p3 = scmp.ne.s32.totalorder %s32_s19, %s1949_s29  ;;  %p1955_p5 = scmp.lt.s32.totalorder %s1949_s29, %s1949_s29 }
   0xe   :  { %p1956_p6 = por %p1955_p5, %p1954_p4 }
  0x10   :  { %p1957_p7 = pnand %p1956_p6, %p1950_p3 }
  0x12   :  { %1960 = shalt.err (!%p1957_p7)
}
  0x13   :  { %s2081_s30 = smov 128   ;;  %s2082_s6 = smov 8  }
  0x14   :  { %37 = dma.hbm_to_vmem [thread:$0]  %s2363_s1, 256, %s32_s19, [#allocation6], %s2081_s30, %s2081_s30, %s2082_s6  }
  0x15   :  { %s1961_s11 = scalar_lea.hbm %s2365_s3, 256 }
  0x16   :  { %p1962_p8 = scmp.ne.s32.totalorder %s2365_s3, %s1961_s11  ;;  %p1965_p9 = scmp.lt.u32.totalorder %s1961_s11, %s2365_s3 }
  0x18   :  { %p1967_p10 = pnand %p1965_p9, %p1962_p8 }
  0x1a   :  { %1970 = shalt.err (!%p1967_p10)
}
  0x1b   :  { %s1971_s16 = scalar_lea.vmem %s2124_s21, 256  ;;  %p1976_p12 = scmp.lt.s32.totalorder %s2124_s21, %s2124_s21 }
  0x1c   :  { %p1972_p11 = scmp.ne.s32.totalorder %s2124_s21, %s1971_s16  ;;  %p1977_p13 = scmp.lt.s32.totalorder %s1971_s16, %s1971_s16 }
  0x1e   :  { %p1978_p0 = por %p1977_p13, %p1976_p12 }
  0x20   :  { %p1979_p1 = pnand %p1978_p0, %p1972_p11 }
  0x22   :  { %1982 = shalt.err (!%p1979_p1)
}
  0x23   :  { %61 = dma.hbm_to_vmem [thread:$0]  %s2365_s3, 256, %s2124_s21, [#allocation9], %s2081_s30, %s2081_s30, %s2082_s6  }
  0x24   :  { %s2083_s18 = smov [#allocation2]   ;;  %s2084_s20 = smov [#allocation7]  }
  0x25   :  { %s19_s19 = sshll.u32 %s2083_s18, 4  ;;  %s43_s22 = sshll.u32 %s2084_s20, 4  ;;  %s20_s19 = int_to_ptr.vmem [resolvable:$true] %s19_s19  ;;  %s2161_s22 = int_to_ptr.vmem [resolvable:$true] %s43_s22 }
  0x26   :  { %s1983_s25 = scalar_lea.hbm %s2362_s0, 256 }
  0x27   :  { %p1984_p2 = scmp.ne.s32.totalorder %s2362_s0, %s1983_s25  ;;  %p1987_p3 = scmp.lt.u32.totalorder %s1983_s25, %s2362_s0 }
  0x29   :  { %p1989_p4 = pnand %p1987_p3, %p1984_p2 }
  0x2b   :  { %1992 = shalt.err (!%p1989_p4)
}
  0x2c   :  { %s1993_s3 = scalar_lea.vmem %s20_s19, 256  ;;  %p1998_p6 = scmp.lt.s32.totalorder %s20_s19, %s20_s19 }
  0x2d   :  { %p1994_p5 = scmp.ne.s32.totalorder %s20_s19, %s1993_s3  ;;  %p1999_p7 = scmp.lt.s32.totalorder %s1993_s3, %s1993_s3 }
  0x2f   :  { %p2000_p8 = por %p1999_p7, %p1998_p6 }
  0x31   :  { %p2001_p9 = pnand %p2000_p8, %p1994_p5 }
  0x33   :  { %2004 = shalt.err (!%p2001_p9)
}
  0x34   :  { %25 = dma.hbm_to_vmem [thread:$0]  %s2362_s0, 256, %s20_s19, [#allocation3], %s2081_s30, %s2081_s30, %s2082_s6  }
  0x35   :  { %s2005_s10 = scalar_lea.hbm %s2364_s2, 256 }
  0x36   :  { %p2006_p10 = scmp.ne.s32.totalorder %s2364_s2, %s2005_s10  ;;  %p2009_p11 = scmp.lt.u32.totalorder %s2005_s10, %s2364_s2 }
  0x38   :  { %p2011_p12 = pnand %p2009_p11, %p2006_p10 }
  0x3a   :  { %2014 = shalt.err (!%p2011_p12)
}
  0x3b   :  { %s2015_s15 = scalar_lea.vmem %s2161_s22, 256  ;;  %p2020_p0 = scmp.lt.s32.totalorder %s2161_s22, %s2161_s22 }
  0x3c   :  { %p2016_p13 = scmp.ne.s32.totalorder %s2161_s22, %s2015_s15  ;;  %p2021_p1 = scmp.lt.s32.totalorder %s2015_s15, %s2015_s15 }
  0x3e   :  { %p2022_p2 = por %p2021_p1, %p2020_p0 }
  0x40   :  { %p2023_p3 = pnand %p2022_p2, %p2016_p13 }
  0x42   :  { %2026 = shalt.err (!%p2023_p3)
}
  0x43   :  { %49 = dma.hbm_to_vmem [thread:$0]  %s2364_s2, 256, %s2161_s22, [#allocation6], %s2081_s30, %s2081_s30, %s2082_s6  }
  0x44   :  { %s2085_s1 = smov [#allocation10]   ;;  %s2027_s20 = scalar_lea.hbm %s2366_s4, 256 }
  0x45   :  { %s67_s17 = sshll.u32 %s2085_s1, 4  ;;  %p2028_p4 = scmp.ne.s32.totalorder %s2366_s4, %s2027_s20  ;;  %s68_s17 = int_to_ptr.vmem [resolvable:$true] %s67_s17 }
  0x46   :  { %p2031_p5 = scmp.lt.u32.totalorder %s2027_s20, %s2366_s4 }
  0x48   :  { %p2033_p6 = pnand %p2031_p5, %p2028_p4 }
  0x4a   :  { %2036 = shalt.err (!%p2033_p6)
}
  0x4b   :  { %s2037_s27 = scalar_lea.vmem %s68_s17, 256  ;;  %p2042_p8 = scmp.lt.s32.totalorder %s68_s17, %s68_s17 }
  0x4c   :  { %p2038_p7 = scmp.ne.s32.totalorder %s68_s17, %s2037_s27  ;;  %p2043_p9 = scmp.lt.s32.totalorder %s2037_s27, %s2037_s27 }
  0x4e   :  { %p2044_p10 = por %p2043_p9, %p2042_p8 }
  0x50   :  { %p2045_p11 = pnand %p2044_p10, %p2038_p7 }
  0x52   :  { %2048 = shalt.err (!%p2045_p11)
}
  0x53   :  { %73 = dma.hbm_to_vmem [thread:$0]  %s2366_s4, 256, %s68_s17, [#allocation9], %s2081_s30, %s2081_s30, %s2082_s6  }
  0x54   :  { %2071 = dma.done.wait [#allocation3], 256  }
  0x55   :  { %2072 = vsyncadd [#allocation3], 4294967040 }
  0x56   :  { %2073 = dma.done.wait [#allocation6], 512  }
  0x57   :  { %2074 = vsyncadd [#allocation6], 4294966784 }
  0x58   :  { %2075 = dma.done.wait [#allocation9], 512  }
  0x59   :  { %2076 = vsyncadd [#allocation9], 4294966784  ;;  %vm95_vm0 = vcmask 130048   ;;  %v179_v0 = vld [vmem:[#allocation8] sm:$0xff]  ;;  %v180_v1 = vld [vmem:[#allocation8 + $0x8] sm:$0xff]  ;;  %v2086_v10 = vmov 0.0  }
  0x5a   :  { %v93_v2 = vld [vmem:[#allocation7] sm:$0xff]  ;;  %v1884_v3 = vpack.c.bf16 %v180_v1, %v179_v0  ;;  %v94_v4 = vld [vmem:[#allocation7 + $0x8] sm:$0xff]  ;;  %v91_v5 = vld [vmem:[#allocation5] sm:$0xff]  ;;  %vm2087_vm1 = vmmov 0   ;;  %vm387_vm2 = vcmask 64512   ;;  %s2088_s4 = smov 120  }
  0x5b   :  { %v89_v6 = vld [vmem:[#allocation2] sm:$0xff]  ;;  %v1880_v7 = vpack.c.bf16 %v94_v4, %v93_v2  ;;  %1790 = vmatprep.mubr.msk.f32.mxu1 %vm95_vm0, %v91_v5  ;;  %v92_v8 = vld [vmem:[#allocation5 + $0x8] sm:$0xff]  ;;  %v90_v9 = vld [vmem:[#allocation2 + $0x8] sm:$0xff]  ;;  %s2089_s28 = smov 112   ;;  %s2090_s29 = smov 104   ;;  %vm1666_vm3 = vcmask 195584  }
  0x5c   :  { %1783 = vmatprep.mubr.msk.f32.mxu0 %vm95_vm0, %v89_v6  ;;  %1885 = vmatprep.subr.bf16.mxu1 %v1884_v3  ;;  %v262_v11 = vld [vmem:[#allocation10] sm:$0xff]  ;;  %v263_v12 = vld [vmem:[#allocation10 + $0x8] sm:$0xff]  ;;  %s2091_s3 = smov 16   ;;  %s2092_s21 = smov 24   ;;  %vm1683_vm4 = vcmask 261120  }
  0x5d   :  { %1881 = vmatprep.subr.bf16.mxu0 %v1880_v7  ;;  %1887 = vmatpush3.bf16.msra.mxu1 %v1884_v3  ;;  %v1888_v13 = vpack.c.bf16 %v263_v12, %v262_v11  ;;  %s2093_s7 = smov [#allocation11]  }
  0x5e   :  { %1883 = vmatpush3.bf16.msra.mxu0 %v1880_v7  ;;  %1800 = vmatprep.subr.mxu1 %v2086_v10  ;;  %s1691_s8 = sshll.u32 %s2093_s7, 4  ;;  %s1692_s8 = int_to_ptr.vmem [resolvable:$true] %s1691_s8 }
  0x5f   :  { %1889 = vmatprep.subr.bf16.mxu0 %v1888_v13  ;;  %s2049_s9 = scalar_lea.vmem %s1692_s8, 256  ;;  %p2054_p13 = scmp.lt.s32.totalorder %s1692_s8, %s1692_s8 }
  0x60   :  { %1791 = vmatmul.mubr.msk.f32.vlgmr.msra.gmra.mrb[0].mxu1 %vm95_vm0, %v92_v8  ;;  %p2050_p12 = scmp.ne.s32.totalorder %s1692_s8, %s2049_s9  ;;  %p2055_p0 = scmp.lt.s32.totalorder %s2049_s9, %s2049_s9 }
  0x61   :  { %1784 = vmatmul.mubr.msk.f32.vlgmr.msra.gmra.mrb[0].mxu0 %vm95_vm0, %v90_v9  ;;  %1802 = vmatprep.mubr.msk.f32.mxu1 %vm2087_vm1, %v2086_v10 }
  0x62   :  { %1797 = vmatprep.mubr.msk.f32.mxu0 %vm95_vm0, %v91_v5  ;;  %1891 = vmatpush3.bf16.msra.mxu0 %v1888_v13  ;;  %p2056_p1 = por %p2055_p0, %p2054_p13 }
  0x63   :  { %1805 = vmatprep.subr.mxu0 %v2086_v10 }
  0x64   :  { %p2057_p2 = pnand %p2056_p1, %p2050_p12 }
  0x65   :  { %1798 = vmatmul.mubr.msk.f32.vlgmr.msra.gmra.mrb[2].mxu0 %vm95_vm0, %v92_v8 }
  0x66   :  { %1807 = vmatprep.mubr.msk.f32.mxu0 %vm2087_vm1, %v2086_v10 }
 0x133   :  { %v1792_v14 = vpop.f32.mrb[0].mxu1 }
 0x134   :  { %361 = vrot.lane.b32.xlu0 %v1792_v14, %s2088_s4  ;;  %v1785_v15 = vpop.f32.mrb[0].mxu0  ;;  %v253_v16 = vpop.f32.mrb[1].mxu1 }
 0x135   :  { %356 = vrot.lane.b32.xlu1 %v253_v16, %s2089_s28  ;;  %v168_v17 = vpop.f32.mrb[1].mxu0  ;;  %1801 = vmatpush3.xpose.msk.msra.mxu1 %vm387_vm2, %v253_v16  ;;  %v178_v19 = vmul.f32 0.25, %v1785_v15 }
 0x136   :  { %v177_v18 = vmul.f32 0.25, %v168_v17  ;;  %1810 = vmatprep.subr.mxu1 %v2086_v10 }
 0x138   :  { %354 = vrot.lane.b32.xlu0 %v253_v16, %s2088_s4  ;;  %1803 = vmatmul.mubr.msk.f32.vlgmr.msra.gmra.mrb[2].mxu1 %vm387_vm2, %v177_v18  ;;  %v2242_v20 = vpop.f32.mrb[2].mxu0 }
 0x139   :  { %358 = vrot.lane.b32.xlu1 %v253_v16, %s2090_s29  ;;  %1812 = vmatprep.mubr.msk.f32.mxu1 %vm2087_vm1, %v2086_v10  ;;  %v2244_v21 = vpop.f32.mrb[3].mxu0 }
 0x13c   :  { %340 = vrot.lane.b32.xlu0 %v177_v18, %s2088_s4 }
 0x13d   :  { %347 = vrot.lane.b32.xlu1 %v178_v19, %s2088_s4 }
 0x140   :  { %342 = vrot.lane.b32.xlu0 %v177_v18, %s2089_s28 }
 0x141   :  { %344 = vrot.lane.b32.xlu1 %v177_v18, %s2090_s29 }
 0x144   :  { %363 = vrot.lane.b32.xlu0 %v1792_v14, %s2089_s28 }
 0x145   :  { %365 = vrot.lane.b32.xlu1 %v1792_v14, %s2090_s29 }
 0x148   :  { %349 = vrot.lane.b32.xlu0 %v178_v19, %s2089_s28 }
 0x149   :  { %351 = vrot.lane.b32.xlu1 %v178_v19, %s2090_s29 }
 0x1a6   :  { %v362_v22 = vpop.permute.xlu0 %361 }
 0x1a7   :  { %v357_v23 = vpop.permute.xlu1 %356 }
 0x1a8   :  { %1811 = vmatpush3.xpose.msk.msra.mxu1 %vm387_vm2, %v357_v23 }
 0x1a9   :  { %1820 = vmatprep.subr.mxu1 %v2086_v10 }
 0x1aa   :  { %v355_v24 = vpop.permute.xlu0 %354 }
 0x1ab   :  { %v359_v25 = vpop.permute.xlu1 %358  ;;  %1806 = vmatpush3.xpose.msk.msra.mxu0 %vm387_vm2, %v355_v24 }
 0x1ac   :  { %1815 = vmatprep.subr.mxu0 %v2086_v10 }
 0x1ae   :  { %v341_v26 = vpop.permute.xlu0 %340 }
 0x1af   :  { %v348_v27 = vpop.permute.xlu1 %347  ;;  %1808 = vmatmul.mubr.msk.f32.vlgmr.msra.gmra.mrb[4].mxu0 %vm387_vm2, %v341_v26 }
 0x1b0   :  { %1816 = vmatpush3.xpose.msk.msra.mxu0 %vm387_vm2, %v359_v25  ;;  %1817 = vmatprep.mubr.msk.f32.mxu0 %vm2087_vm1, %v2086_v10 }
 0x1b1   :  { %1825 = vmatprep.subr.mxu0 %v2086_v10 }
 0x1b2   :  { %v343_v28 = vpop.permute.xlu0 %342 }
 0x1b3   :  { %v345_v29 = vpop.permute.xlu1 %344  ;;  %1813 = vmatmul.mubr.msk.f32.vlgmr.msra.gmra.mrb[4].mxu1 %vm387_vm2, %v343_v28 }
 0x1b4   :  { %1821 = vmatpush3.xpose.msk.msra.mxu1 %vm387_vm2, %v1792_v14  ;;  %1818 = vmatmul.mubr.msk.f32.vlgmr.msra.gmra.mrb[6].mxu0 %vm387_vm2, %v345_v29 }
 0x1b5   :  { %1826 = vmatpush3.xpose.msk.msra.mxu0 %vm387_vm2, %v362_v22  ;;  %1822 = vmatprep.mubr.msk.f32.mxu1 %vm2087_vm1, %v2086_v10 }
 0x1b6   :  { %v364_v30 = vpop.permute.xlu0 %363  ;;  %1830 = vmatprep.subr.mxu1 %v2086_v10  ;;  %1827 = vmatprep.mubr.msk.f32.mxu0 %vm2087_vm1, %v2086_v10 }
 0x1b7   :  { %v366_v31 = vpop.permute.xlu1 %365  ;;  %1823 = vmatmul.mubr.msk.f32.vlgmr.msra.gmra.mrb[6].mxu1 %vm387_vm2, %v178_v19  ;;  %1835 = vmatprep.subr.mxu0 %v2086_v10 }
 0x1b8   :  { %1831 = vmatpush3.xpose.msk.msra.mxu1 %vm387_vm2, %v364_v30  ;;  %1828 = vmatmul.mubr.msk.f32.vlgmr.msra.gmra.mrb[8].mxu0 %vm387_vm2, %v348_v27 }
 0x1b9   :  { %1836 = vmatpush3.xpose.msk.msra.mxu0 %vm387_vm2, %v366_v31  ;;  %1832 = vmatprep.mubr.msk.f32.mxu1 %vm2087_vm1, %v2086_v10 }
 0x1ba   :  { %v350_v32 = vpop.permute.xlu0 %349  ;;  %1837 = vmatprep.mubr.msk.f32.mxu0 %vm2087_vm1, %v2086_v10  ;;  %1840 = vmatprep.subr.mxu1 %v2086_v10 }
 0x1bb   :  { %v352_v33 = vpop.permute.xlu1 %351  ;;  %1833 = vmatmul.mubr.msk.f32.vlgmr.msra.gmra.mrb[8].mxu1 %vm387_vm2, %v350_v32  ;;  %1845 = vmatprep.subr.mxu0 %v2086_v10 }
 0x1bc   :  { %1838 = vmatmul.mubr.msk.f32.vlgmr.msra.gmra.mrb[10].mxu0 %vm387_vm2, %v352_v33  ;;  %1841 = vmatpush3.msra.mxu1 %v2244_v21 }
 0x1bd   :  { %1842 = vmatprep.mubr.msk.f32.mxu1 %vm2087_vm1, %v2086_v10  ;;  %1850 = vmatprep.subr.mxu1 %v2086_v10 }
 0x1be   :  { %1847 = vmatprep.mubr.msk.f32.mxu0 %vm2087_vm1, %v2086_v10 }
 0x20b   :  { %v458_v34 = vpop.f32.mrb[2].mxu1 }
 0x20c   :  { %v980_v35 = vsel %vm387_vm2, %v458_v34, -inf  ;;  %v1804_v36 = vpop.f32.mrb[3].mxu1 }
 0x20d   :  { %981 = vmax.xlane.f32.xlu0 %v980_v35 }
 0x282   :  { %v532_v37 = vpop.f32.mrb[4].mxu0 }
 0x283   :  { %v1809_v38 = vpop.f32.mrb[5].mxu0  ;;  %v983_v39 = vsel %vm387_vm2, %v532_v37, -inf }
 0x284   :  { %984 = vmax.xlane.f32.xlu1 %v983_v39 }
 0x286   :  { %v606_v40 = vpop.f32.mrb[4].mxu1 }
 0x287   :  { %v1814_v41 = vpop.f32.mrb[5].mxu1  ;;  %v680_v42 = vpop.f32.mrb[6].mxu0  ;;  %v986_v43 = vsel %vm387_vm2, %v606_v40, -inf }
 0x288   :  { %v1819_v44 = vpop.f32.mrb[7].mxu0  ;;  %987 = vmax.xlane.f32.xlu0 %v986_v43  ;;  %v989_v48 = vsel %vm387_vm2, %v680_v42, -inf }
 0x28a   :  { %v754_v45 = vpop.f32.mrb[6].mxu1 }
 0x28b   :  { %v1824_v46 = vpop.f32.mrb[7].mxu1  ;;  %v828_v47 = vpop.f32.mrb[8].mxu0  ;;  %v992_v49 = vsel %vm387_vm2, %v754_v45, -inf }
 0x28c   :  { %v1829_v50 = vpop.f32.mrb[9].mxu0  ;;  %990 = vmax.xlane.f32.xlu0 %v989_v48  ;;  %993 = vmax.xlane.f32.xlu1 %v992_v49  ;;  %v995_v54 = vsel %vm387_vm2, %v828_v47, -inf }
 0x28e   :  { %v902_v51 = vpop.f32.mrb[8].mxu1 }
 0x28f   :  { %v1834_v52 = vpop.f32.mrb[9].mxu1  ;;  %v976_v53 = vpop.f32.mrb[10].mxu0  ;;  %v998_v55 = vsel %vm387_vm2, %v902_v51, -inf }
 0x290   :  { %v1839_v56 = vpop.f32.mrb[11].mxu0  ;;  %996 = vmax.xlane.f32.xlu0 %v995_v54  ;;  %999 = vmax.xlane.f32.xlu1 %v998_v55  ;;  %v1001_v57 = vsel %vm387_vm2, %v976_v53, -inf }
 0x294   :  { %1002 = vmax.xlane.f32.xlu0 %v1001_v57 }
 0x29a   :  { %v982_v58 = vpop.xlane.xlu0 %981 }
 0x29b   :  { %v1004_v59 = vsub.f32 %v458_v34, %v982_v58 }
 0x29d   :  { %v1012_v60 = vmul.f32 1.442695, %v1004_v59 }
 0x29f   :  { %1907 = vpow2.f32 %v1012_v60 }
 0x2a1   :  { %368 = vrot.lane.b32.xlu1 %v2244_v21, %s2088_s4 }
 0x2a5   :  { %374 = vrot.lane.b32.xlu1 %v2244_v21, %s2090_s29 }
 0x2a9   :  { %378 = vrot.lane.b32.xlu1 %v2242_v20, %s2088_s4  ;;  %v1908_v61 = vpop.eup %1907 }
 0x2aa   :  { %371 = vrot.lane.b32.xlu0 %v2244_v21, %s2089_s28  ;;  %v1028_v62 = vsel %vm387_vm2, %v1908_v61, 0.0 }
 0x2cd   :  { %1029 = vadd.xlane.f32.xlu1 %v1028_v62 }
 0x311   :  { %v985_v63 = vpop.xlane.xlu1 %984 }
 0x312   :  { %v1005_v0 = vsub.f32 %v532_v37, %v985_v63 }
 0x314   :  { %v1014_v1 = vmul.f32 1.442695, %v1005_v0 }
 0x315   :  { %v988_v2 = vpop.xlane.xlu0 %987 }
 0x316   :  { %1909 = vpow2.f32 %v1014_v1  ;;  %v1006_v3 = vsub.f32 %v606_v40, %v988_v2 }
 0x318   :  { %v1016_v4 = vmul.f32 1.442695, %v1006_v3 }
 0x319   :  { %v991_v5 = vpop.xlane.xlu0 %990  ;;  %v994_v6 = vpop.xlane.xlu1 %993 }
 0x31a   :  { %1911 = vpow2.f32 %v1016_v4  ;;  %v1007_v7 = vsub.f32 %v680_v42, %v991_v5  ;;  %v1008_v8 = vsub.f32 %v754_v45, %v994_v6 }
 0x31c   :  { %v1018_v9 = vmul.f32 1.442695, %v1007_v7  ;;  %v1020_v11 = vmul.f32 1.442695, %v1008_v8 }
 0x31d   :  { %v997_v12 = vpop.xlane.xlu0 %996  ;;  %v1000_v13 = vpop.xlane.xlu1 %999 }
 0x31e   :  { %1913 = vpow2.f32 %v1018_v9  ;;  %v1009_v14 = vsub.f32 %v828_v47, %v997_v12  ;;  %v1010_v15 = vsub.f32 %v902_v51, %v1000_v13 }
 0x31f   :  { %1915 = vpow2.f32 %v1020_v11 }
 0x320   :  { %v1910_v16 = vpop.eup %1909  ;;  %v1022_v17 = vmul.f32 1.442695, %v1009_v14  ;;  %v1024_v18 = vmul.f32 1.442695, %v1010_v15 }
 0x321   :  { %v1003_v19 = vpop.xlane.xlu0 %1002  ;;  %v369_v21 = vpop.permute.xlu1 %368  ;;  %v1031_v22 = vsel %vm387_vm2, %v1910_v16, 0.0 }
 0x322   :  { %1917 = vpow2.f32 %v1022_v17  ;;  %v1011_v23 = vsub.f32 %v976_v53, %v1003_v19  ;;  %1032 = vadd.xlane.f32.xlu0 %v1031_v22  ;;  %1846 = vmatpush3.msra.mxu0 %v369_v21 }
 0x323   :  { %1919 = vpow2.f32 %v1024_v18  ;;  %1855 = vmatprep.subr.mxu0 %v2086_v10 }
 0x324   :  { %v1912_v24 = vpop.eup %1911  ;;  %v1026_v25 = vmul.f32 1.442695, %v1011_v23 }
 0x325   :  { %v1034_v26 = vsel %vm387_vm2, %v1912_v24, 0.0  ;;  %v375_v37 = vpop.permute.xlu1 %374  ;;  %v372_v42 = vpop.permute.xlu0 %371 }
 0x326   :  { %1921 = vpow2.f32 %v1026_v25  ;;  %1035 = vadd.xlane.f32.xlu1 %v1034_v26 }
 0x328   :  { %v1914_v27 = vpop.eup %1913 }
 0x329   :  { %v1916_v28 = vpop.eup %1915  ;;  %v1037_v29 = vsel %vm387_vm2, %v1914_v27, 0.0  ;;  %v379_v38 = vpop.permute.xlu1 %378 }
 0x32a   :  { %1038 = vadd.xlane.f32.xlu0 %v1037_v29  ;;  %v1040_v30 = vsel %vm387_vm2, %v1916_v28, 0.0 }
 0x32b   :  { %1041 = vadd.xlane.f32.xlu1 %v1040_v30 }
 0x32c   :  { %v1918_v31 = vpop.eup %1917 }
 0x32d   :  { %v1920_v32 = vpop.eup %1919  ;;  %v1043_v33 = vsel %vm387_vm2, %v1918_v31, 0.0 }
 0x32e   :  { %1044 = vadd.xlane.f32.xlu0 %v1043_v33  ;;  %v1046_v34 = vsel %vm387_vm2, %v1920_v32, 0.0 }
 0x32f   :  { %1047 = vadd.xlane.f32.xlu1 %v1046_v34 }
 0x330   :  { %v2307_v35 = vpop.eup %1921 }
 0x331   :  { %v1049_v36 = vsel %vm387_vm2, %v2307_v35, 0.0 }
 0x332   :  { %1050 = vadd.xlane.f32.xlu0 %v1049_v36 }
 0x340   :  { %384 = vrot.lane.b32.xlu1 %v2242_v20, %s2090_s29 }
 0x348   :  { %381 = vrot.lane.b32.xlu0 %v2242_v20, %s2089_s28 }
 0x35a   :  { %v1030_v39 = vpop.xlane.xlu1 %1029 }
 0x35b   :  { %1923 = vrcp.f32 %v1030_v39 }
 0x365   :  { %v1924_v40 = vpop.eup %1923 }
 0x366   :  { %v1060_v41 = vmul.f32 %v1924_v40, %v1908_v61 }
 0x368   :  { %1843 = vmatmul.mubr.msk.f32.vlgmr.msra.gmra.mrb[10].mxu1 %vm387_vm2, %v1060_v41 }
 0x369   :  { %1851 = vmatpush3.msra.mxu1 %v372_v42  ;;  %1852 = vmatprep.mubr.msk.f32.mxu1 %vm2087_vm1, %v2086_v10 }
 0x36a   :  { %1860 = vmatprep.subr.mxu1 %v2086_v10 }
 0x3af   :  { %v1033_v43 = vpop.xlane.xlu0 %1032 }
 0x3b0   :  { %1925 = vrcp.f32 %v1033_v43 }
 0x3b3   :  { %v1036_v44 = vpop.xlane.xlu1 %1035 }
 0x3b4   :  { %1927 = vrcp.f32 %v1036_v44 }
 0x3b7   :  { %v1039_v45 = vpop.xlane.xlu0 %1038 }
 0x3b8   :  { %1929 = vrcp.f32 %v1039_v45  ;;  %v1042_v46 = vpop.xlane.xlu1 %1041 }
 0x3b9   :  { %1931 = vrcp.f32 %v1042_v46 }
 0x3ba   :  { %v1926_v47 = vpop.eup %1925 }
 0x3bb   :  { %v1061_v48 = vmul.f32 %v1926_v47, %v1910_v16  ;;  %v1045_v49 = vpop.xlane.xlu0 %1044 }
 0x3bc   :  { %1933 = vrcp.f32 %v1045_v49  ;;  %v1048_v50 = vpop.xlane.xlu1 %1047 }
 0x3bd   :  { %1935 = vrcp.f32 %v1048_v50  ;;  %1848 = vmatmul.mubr.msk.f32.vlgmr.msra.gmra.mrb[12].mxu0 %vm387_vm2, %v1061_v48 }
 0x3be   :  { %v1928_v51 = vpop.eup %1927  ;;  %1856 = vmatpush3.msra.mxu0 %v375_v37  ;;  %1857 = vmatprep.mubr.msk.f32.mxu0 %vm2087_vm1, %v2086_v10 }
 0x3bf   :  { %v1062_v52 = vmul.f32 %v1928_v51, %v1912_v24  ;;  %v1051_v53 = vpop.xlane.xlu0 %1050  ;;  %1865 = vmatprep.subr.mxu0 %v2086_v10 }
 0x3c0   :  { %1937 = vrcp.f32 %v1051_v53  ;;  %v385_v62 = vpop.permute.xlu1 %384 }
 0x3c1   :  { %1853 = vmatmul.mubr.msk.f32.vlgmr.msra.gmra.mrb[12].mxu1 %vm387_vm2, %v1062_v52 }
 0x3c2   :  { %v1930_v54 = vpop.eup %1929  ;;  %1861 = vmatpush3.msra.mxu1 %v2242_v20  ;;  %1862 = vmatprep.mubr.msk.f32.mxu1 %vm2087_vm1, %v2086_v10 }
 0x3c3   :  { %v1932_v55 = vpop.eup %1931  ;;  %v1063_v56 = vmul.f32 %v1930_v54, %v1914_v27  ;;  %1870 = vmatprep.subr.mxu1 %v2086_v10  ;;  %v382_v58 = vpop.permute.xlu0 %381 }
 0x3c4   :  { %v1064_v57 = vmul.f32 %v1932_v55, %v1916_v28 }
 0x3c5   :  { %1858 = vmatmul.mubr.msk.f32.vlgmr.msra.gmra.mrb[14].mxu0 %vm387_vm2, %v1063_v56 }
 0x3c6   :  { %v1934_v59 = vpop.eup %1933  ;;  %1863 = vmatmul.mubr.msk.f32.vlgmr.msra.gmra.mrb[14].mxu1 %vm387_vm2, %v1064_v57  ;;  %1866 = vmatpush3.msra.mxu0 %v379_v38 }
 0x3c7   :  { %v1936_v60 = vpop.eup %1935  ;;  %v1065_v61 = vmul.f32 %v1934_v59, %v1918_v31  ;;  %1871 = vmatpush3.msra.mxu1 %v382_v58  ;;  %1867 = vmatprep.mubr.msk.f32.mxu0 %vm2087_vm1, %v2086_v10 }
 0x3c8   :  { %v1066_v20 = vmul.f32 %v1936_v60, %v1920_v32  ;;  %1872 = vmatprep.mubr.msk.f32.mxu1 %vm2087_vm1, %v2086_v10  ;;  %1875 = vmatprep.subr.mxu0 %v2086_v10 }
 0x3c9   :  { %1868 = vmatmul.mubr.msk.f32.vlgmr.msra.gmra.mrb[16].mxu0 %vm387_vm2, %v1065_v61 }
 0x3ca   :  { %v1938_v63 = vpop.eup %1937  ;;  %1873 = vmatmul.mubr.msk.f32.vlgmr.msra.gmra.mrb[16].mxu1 %vm387_vm2, %v1066_v20  ;;  %1876 = vmatpush3.msra.mxu0 %v385_v62 }
 0x3cb   :  { %v1067_v0 = vmul.f32 %v1938_v63, %v2307_v35  ;;  %1877 = vmatprep.mubr.msk.f32.mxu0 %vm2087_vm1, %v2086_v10 }
 0x3cd   :  { %1878 = vmatmul.mubr.msk.f32.vlgmr.msra.gmra.mrb[18].mxu0 %vm387_vm2, %v1067_v0 }
 0x43b   :  { %v1137_v1 = vpop.f32.mrb[10].mxu1 }
 0x43c   :  { %v1844_v2 = vpop.f32.mrb[11].mxu1 }
 0x490   :  { %v1210_v3 = vpop.f32.mrb[12].mxu0 }
 0x491   :  { %1653 = vrot.lane.b32.xlu0 %v1210_v3, %s2082_s6  ;;  %v1849_v4 = vpop.f32.mrb[13].mxu0 }
 0x494   :  { %v1283_v5 = vpop.f32.mrb[12].mxu1 }
 0x495   :  { %1657 = vrot.lane.b32.xlu0 %v1283_v5, %s2091_s3  ;;  %v1854_v6 = vpop.f32.mrb[13].mxu1 }
 0x498   :  { %v1356_v7 = vpop.f32.mrb[14].mxu0 }
 0x499   :  { %v1429_v8 = vpop.f32.mrb[14].mxu1  ;;  %v1859_v9 = vpop.f32.mrb[15].mxu0  ;;  %1661 = vrot.lane.b32.xlu0 %v1356_v7, %s2092_s21 }
 0x49a   :  { %v1864_v11 = vpop.f32.mrb[15].mxu1 }
 0x49c   :  { %v1502_v12 = vpop.f32.mrb[16].mxu0 }
 0x49d   :  { %v1575_v10 = vpop.f32.mrb[16].mxu1  ;;  %1669 = vrot.lane.b32.xlu1 %v1502_v12, %s2082_s6  ;;  %v1869_v13 = vpop.f32.mrb[17].mxu0 }
 0x49e   :  { %v1874_v14 = vpop.f32.mrb[17].mxu1 }
 0x4a0   :  { %v1648_v15 = vpop.f32.mrb[18].mxu0 }
 0x4a1   :  { %v1879_v16 = vpop.f32.mrb[19].mxu0  ;;  %1673 = vrot.lane.b32.xlu1 %v1575_v10, %s2091_s3 }
 0x4a5   :  { %1677 = vrot.lane.b32.xlu1 %v1648_v15, %s2092_s21 }
 0x503   :  { %v1654_v17 = vpop.permute.xlu0 %1653 }
 0x504   :  { %v1664_v19 = vsel %vm387_vm2, %v1137_v1, %v1654_v17 }
 0x507   :  { %v1658_v18 = vpop.permute.xlu0 %1657 }
 0x508   :  { %v1665_v21 = vsel %vm95_vm0, %v1664_v19, %v1658_v18 }
 0x50b   :  { %v1662_v22 = vpop.permute.xlu0 %1661 }
 0x50c   :  { %v1667_v23 = vsel %vm1666_vm3, %v1665_v21, %v1662_v22 }
 0x50d   :  { %1684 = vst.msk [vmem:[#allocation11] sm:$0xff] %vm1683_vm4, %v1667_v23 }
 0x50f   :  { %v1670_v24 = vpop.permute.xlu1 %1669 }
 0x510   :  { %v1680_v26 = vsel %vm387_vm2, %v1429_v8, %v1670_v24 }
 0x513   :  { %v1674_v25 = vpop.permute.xlu1 %1673 }
 0x514   :  { %v1681_v27 = vsel %vm95_vm0, %v1680_v26, %v1674_v25 }
 0x517   :  { %v1678_v28 = vpop.permute.xlu1 %1677 }
 0x518   :  { %v1682_v29 = vsel %vm1666_vm3, %v1681_v27, %v1678_v28 }
 0x519   :  { %1685 = vst.msk [vmem:[#allocation11 + $0x8] sm:$0xff] %vm1683_vm4, %v1682_v29 }
 0x51a   :  { %2060 = shalt.err (!%p2057_p2)
}
 0x51b   :  { %s2061_s12 = scalar_lea.hbm %s2367_s5, 256 }
 0x51c   :  { %p2062_p3 = scmp.ne.s32.totalorder %s2367_s5, %s2061_s12  ;;  %p2065_p4 = scmp.lt.u32.totalorder %s2061_s12, %s2367_s5 }
 0x51e   :  { %p2067_p5 = pnand %p2065_p4, %p2062_p3 }
 0x520   :  { %2070 = shalt.err (!%p2067_p5)
}
 0x521   :  { %1697 = dma.vmem_to_hbm [thread:$0]  %s1692_s8, 256, %s2367_s5, [#allocation4], %s2081_s30, %s2081_s30, %s2082_s6  }
 0x522   :  { %2077 = dma.done.wait [#allocation4], 256  }
 0x523   :  { %2078 = vsyncadd [#allocation4], 4294967040 }
 0x524   :  { %1701 = vsyncpa [#allocation3], 1 }
 0x525   :  { %1702 = vsyncpa [#allocation6], 1 }
 0x526   :  { %1703 = vsyncpa [#allocation9], 1 }
 0x527   :  { %1704 = vsyncpa [#allocation4], 1 }

</bundles_post_ra>
